<compile_context>
chip_gen: v7x
topology: tpu7x:2x2x1
jax: 0.10.0
libtpu: 0.0.40
codegen_flags: <defaults>
</compile_context>

<pallas_src>
import functools

import jax
import jax.numpy as jnp
from jax.experimental import pallas as pl
from jax.experimental.pallas import tpu as pltpu


NEG_SLOPE = 0.01   # PyTorch F.leaky_relu default
BN_EPS = 1e-5      # PyTorch BatchNorm1d default


def _leaky(h):
    return jnp.where(h >= 0, h, NEG_SLOPE * h)


def _bn(h, gamma, beta):
    # PyTorch BatchNorm1d training-mode forward: batch mean, biased variance.
    # Fused affine: scale = gamma * rsqrt(var + eps)  (rsqrt -> EUP slot).
    mu = jnp.mean(h, axis=0, keepdims=True)
    hc = h - mu
    var = jnp.mean(hc * hc, axis=0, keepdims=True)
    scale = gamma * jax.lax.rsqrt(var + BN_EPS)
    return hc * scale + beta


def _round_up(n, m):
    return ((n + m - 1) // m) * m


# --------------------------------------------------------------------------
# Kernel: whole (tiny) MLP in one invocation, everything resident in VMEM.
# --------------------------------------------------------------------------
def mlp_kernel(x_ref, w_ref, p_ref, o_ref):
    # Packed per-feature params (rows): gamma0, beta0, gamma1, beta1, b2, 0, 0, 0
    pp = p_ref[...]
    g0, be0 = pp[0:1, :], pp[1:2, :]
    g1, be1 = pp[2:3, :], pp[3:4, :]
    b2 = pp[4:5, :]

    # Layer 0: Linear (bias cancelled by BN) + BN + LeakyReLU.
    h = jnp.dot(x_ref[...], w_ref[0], preferred_element_type=jnp.float32)
    h = _leaky(_bn(h, g0, be0))

    # Layer 1: Linear (bias cancelled by BN) + BN + LeakyReLU.
    h = jnp.dot(h, w_ref[1], preferred_element_type=jnp.float32)
    h = _leaky(_bn(h, g1, be1))

    # Layer 2: Linear (+bias) + LeakyReLU (no BN on last layer).
    h = jnp.dot(h, w_ref[2], preferred_element_type=jnp.float32) + b2
    o_ref[...] = _leaky(h)


# --------------------------------------------------------------------------
# One-time parameter preparation (hoisted out of the per-call hot path).
# --------------------------------------------------------------------------
def pack_params(params, input_dim, hidden, output_dim):
    """Zero-pad every feature dim to a common lane-dense width P (multiple of
    128), stack the three weight matrices into ONE operand, and pack all small
    per-feature vectors into ONE (8, P) block.  Call once at init time."""
    (w0, b0, g0, be0, w1, b1, g1, be1, w2, b2) = params
    del b0, b1  # exactly cancelled by training-mode BN mean subtraction

    P = _round_up(max(input_dim, hidden, output_dim, 128), 128)

    def pad_w(w):
        r, c = w.shape
        return jnp.pad(w, ((0, P - r), (0, P - c)))

    # One (3, P, P) f32 operand instead of three separate weight DMAs.
    w_stack = jnp.stack([pad_w(w0), pad_w(w1), pad_w(w2)]).astype(jnp.float32)

    # One (8, P) f32 operand for all per-feature vectors (zero padding is what
    # keeps the padded hidden/output lanes exactly zero through BN + bias).
    pack = jnp.zeros((8, P), jnp.float32)
    pack = pack.at[0, :hidden].set(g0.reshape(-1))
    pack = pack.at[1, :hidden].set(be0.reshape(-1))
    pack = pack.at[2, :hidden].set(g1.reshape(-1))
    pack = pack.at[3, :hidden].set(be1.reshape(-1))
    pack = pack.at[4, :output_dim].set(b2.reshape(-1))
    return w_stack, pack, P


# --------------------------------------------------------------------------
# Hot path: pad x + one pallas_call, under a single jit.  Returns the
# lane-dense padded (B, P) output; slice [:, :output_dim] only if needed.
# --------------------------------------------------------------------------
@jax.jit
def mlp_forward(x, w_stack, pack):
    B, d_in = x.shape
    P = w_stack.shape[-1]
    x_p = jnp.pad(x, ((0, 0), (0, P - d_in))).astype(jnp.float32)

    vmem = pl.BlockSpec(memory_space=pltpu.MemorySpace.VMEM)
    return pl.pallas_call(
        mlp_kernel,
        out_shape=jax.ShapeDtypeStruct((B, P), jnp.float32),
        in_specs=[vmem, vmem, vmem],
        out_specs=vmem,
    )(x_p, w_stack, pack)


# --------------------------------------------------------------------------
# Pure-JAX reference (PyTorch-equivalent, biases included, training-mode BN).
# --------------------------------------------------------------------------
def mlp_reference(x, params):
    (w0, b0, g0, be0, w1, b1, g1, be1, w2, b2) = params
    h = x @ w0 + b0
    h = _leaky(_bn(h, g0, be0))
    h = h @ w1 + b1
    h = _leaky(_bn(h, g1, be1))
    h = h @ w2 + b2
    return _leaky(h)


def init_params(key, input_dim, hidden, output_dim):
    ks = jax.random.split(key, 6)

    def lin(kw, kb, fan_in, fan_out):
        bound = 1.0 / jnp.sqrt(fan_in)
        w = jax.random.uniform(kw, (fan_in, fan_out), jnp.float32, -bound, bound)
        b = jax.random.uniform(kb, (1, fan_out), jnp.float32, -bound, bound)
        return w, b

    w0, b0 = lin(ks[0], ks[1], input_dim, hidden)
    w1, b1 = lin(ks[2], ks[3], hidden, hidden)
    w2, b2 = lin(ks[4], ks[5], hidden, output_dim)
    g0 = jnp.ones((1, hidden), jnp.float32)
    be0 = jnp.zeros((1, hidden), jnp.float32)
    g1 = jnp.ones((1, hidden), jnp.float32)
    be1 = jnp.zeros((1, hidden), jnp.float32)
    return (w0, b0, g0, be0, w1, b1, g1, be1, w2, b2)


if __name__ == "__main__":
    B, INPUT_DIM, HIDDEN, OUTPUT_DIM = 8, 32, 64, 16

    key = jax.random.PRNGKey(0)
    kx, kp = jax.random.split(key)
    x = jax.random.normal(kx, (B, INPUT_DIM), jnp.float32)
    params = init_params(kp, INPUT_DIM, HIDDEN, OUTPUT_DIM)

    # One-time prep (outside the hot path).
    w_stack, pack, P = pack_params(params, INPUT_DIM, HIDDEN, OUTPUT_DIM)
    w_stack, pack = jax.block_until_ready((w_stack, pack))

    # Hot path: one jit'd call -> lane-dense padded output.
    out_padded = jax.block_until_ready(mlp_forward(x, w_stack, pack))
    assert out_padded.shape == (B, P)

    # Validation: slice the real columns and compare with the f32 reference.
    out = out_padded[:, :OUTPUT_DIM]
    ref = mlp_reference(x, params)
    assert out.shape == (B, OUTPUT_DIM)
    # f32 end-to-end; tolerance covers default TPU matmul precision differences
    # between the Mosaic MXU dot and the XLA reference dot.
    assert jnp.allclose(out, ref, atol=2e-2, rtol=2e-2), "mismatch vs JAX reference"
    # Padded lanes are exactly zero by construction (zero-packed gamma/beta/b2).
    assert jnp.all(out_padded[:, OUTPUT_DIM:] == 0.0)

    print("KERNEL_OK")
</pallas_src>

<mosaic_0001>
module attributes {stable_mosaic.version = 11 : i64} {
  func.func @mlp_kernel(%arg0: memref<8x128xf32, #tpu.memory_space<vmem>>, %arg1: memref<3x128x128xf32, #tpu.memory_space<vmem>>, %arg2: memref<8x128xf32, #tpu.memory_space<vmem>>, %arg3: memref<8x128xf32, #tpu.memory_space<vmem>>) attributes {dimension_semantics = [], scalar_prefetch = 0 : i64, scratch_operands = 0 : i64, tpu.core_type = #tpu.core_type<tc>} {
    %c0 = arith.constant 0 : index
    %c0_0 = arith.constant 0 : index
    %0 = vector.load %arg2[%c0, %c0_0] : memref<8x128xf32, #tpu.memory_space<vmem>>, vector<8x128xf32>
    %1 = vector.extract_strided_slice %0 {offsets = [0, 0], sizes = [1, 128], strides = [1, 1]} : vector<8x128xf32> to vector<1x128xf32>
    %2 = vector.extract_strided_slice %0 {offsets = [1, 0], sizes = [1, 128], strides = [1, 1]} : vector<8x128xf32> to vector<1x128xf32>
    %3 = vector.extract_strided_slice %0 {offsets = [2, 0], sizes = [1, 128], strides = [1, 1]} : vector<8x128xf32> to vector<1x128xf32>
    %4 = vector.extract_strided_slice %0 {offsets = [3, 0], sizes = [1, 128], strides = [1, 1]} : vector<8x128xf32> to vector<1x128xf32>
    %5 = vector.extract_strided_slice %0 {offsets = [4, 0], sizes = [1, 128], strides = [1, 1]} : vector<8x128xf32> to vector<1x128xf32>
    %c0_1 = arith.constant 0 : index
    %c0_2 = arith.constant 0 : index
    %6 = vector.load %arg0[%c0_1, %c0_2] : memref<8x128xf32, #tpu.memory_space<vmem>>, vector<8x128xf32>
    %c0_3 = arith.constant 0 : index
    %c0_4 = arith.constant 0 : index
    %c0_5 = arith.constant 0 : index
    %7 = vector.load %arg1[%c0_3, %c0_4, %c0_5] : memref<3x128x128xf32, #tpu.memory_space<vmem>>, vector<1x128x128xf32>
    %8 = vector.shape_cast %7 : vector<1x128x128xf32> to vector<128x128xf32>
    %cst = arith.constant dense<0.000000e+00> : vector<8x128xf32>
    %9 = tpu.matmul %6, %8, %cst {dimension_numbers = #tpu.dot_dimension_numbers<[1], [0], [0], [1], [0, 0, 1, 1], [], []>} : vector<8x128xf32>, vector<128x128xf32>, vector<8x128xf32> -> vector<8x128xf32>
    %cst_6 = arith.constant dense<0.000000e+00> : vector<128xf32>
    %10 = vector.multi_reduction <add>, %9, %cst_6 [0] : vector<8x128xf32> to vector<128xf32>
    %11 = vector.shape_cast %10 : vector<128xf32> to vector<1x128xf32>
    %cst_7 = arith.constant 8.000000e+00 : f32
    %12 = vector.broadcast %cst_7 : f32 to vector<1x128xf32>
    %13 = arith.divf %11, %12 : vector<1x128xf32>
    %14 = vector.broadcast %13 : vector<1x128xf32> to vector<8x128xf32>
    %15 = arith.subf %9, %14 : vector<8x128xf32>
    %16 = arith.mulf %15, %15 : vector<8x128xf32>
    %cst_8 = arith.constant dense<0.000000e+00> : vector<128xf32>
    %17 = vector.multi_reduction <add>, %16, %cst_8 [0] : vector<8x128xf32> to vector<128xf32>
    %18 = vector.shape_cast %17 : vector<128xf32> to vector<1x128xf32>
    %cst_9 = arith.constant 8.000000e+00 : f32
    %19 = vector.broadcast %cst_9 : f32 to vector<1x128xf32>
    %20 = arith.divf %18, %19 : vector<1x128xf32>
    %cst_10 = arith.constant 9.99999974E-6 : f32
    %21 = vector.broadcast %cst_10 : f32 to vector<1x128xf32>
    %22 = arith.addf %20, %21 : vector<1x128xf32>
    %23 = math.rsqrt %22 : vector<1x128xf32>
    %24 = arith.mulf %1, %23 : vector<1x128xf32>
    %25 = vector.broadcast %24 : vector<1x128xf32> to vector<8x128xf32>
    %26 = arith.mulf %15, %25 : vector<8x128xf32>
    %27 = vector.broadcast %2 : vector<1x128xf32> to vector<8x128xf32>
    %28 = arith.addf %26, %27 : vector<8x128xf32>
    %cst_11 = arith.constant 0.000000e+00 : f32
    %29 = vector.broadcast %cst_11 : f32 to vector<8x128xf32>
    %30 = arith.cmpf oge, %28, %29 : vector<8x128xf32>
    %cst_12 = arith.constant 0.00999999977 : f32
    %31 = vector.broadcast %cst_12 : f32 to vector<8x128xf32>
    %32 = arith.mulf %31, %28 : vector<8x128xf32>
    %33 = arith.select %30, %28, %32 : vector<8x128xi1>, vector<8x128xf32>
    %c1 = arith.constant 1 : index
    %c0_13 = arith.constant 0 : index
    %c0_14 = arith.constant 0 : index
    %34 = vector.load %arg1[%c1, %c0_13, %c0_14] : memref<3x128x128xf32, #tpu.memory_space<vmem>>, vector<1x128x128xf32>
    %35 = vector.shape_cast %34 : vector<1x128x128xf32> to vector<128x128xf32>
    %cst_15 = arith.constant dense<0.000000e+00> : vector<8x128xf32>
    %36 = tpu.matmul %33, %35, %cst_15 {dimension_numbers = #tpu.dot_dimension_numbers<[1], [0], [0], [1], [0, 0, 1, 1], [], []>} : vector<8x128xf32>, vector<128x128xf32>, vector<8x128xf32> -> vector<8x128xf32>
    %cst_16 = arith.constant dense<0.000000e+00> : vector<128xf32>
    %37 = vector.multi_reduction <add>, %36, %cst_16 [0] : vector<8x128xf32> to vector<128xf32>
    %38 = vector.shape_cast %37 : vector<128xf32> to vector<1x128xf32>
    %cst_17 = arith.constant 8.000000e+00 : f32
    %39 = vector.broadcast %cst_17 : f32 to vector<1x128xf32>
    %40 = arith.divf %38, %39 : vector<1x128xf32>
    %41 = vector.broadcast %40 : vector<1x128xf32> to vector<8x128xf32>
    %42 = arith.subf %36, %41 : vector<8x128xf32>
    %43 = arith.mulf %42, %42 : vector<8x128xf32>
    %cst_18 = arith.constant dense<0.000000e+00> : vector<128xf32>
    %44 = vector.multi_reduction <add>, %43, %cst_18 [0] : vector<8x128xf32> to vector<128xf32>
    %45 = vector.shape_cast %44 : vector<128xf32> to vector<1x128xf32>
    %cst_19 = arith.constant 8.000000e+00 : f32
    %46 = vector.broadcast %cst_19 : f32 to vector<1x128xf32>
    %47 = arith.divf %45, %46 : vector<1x128xf32>
    %cst_20 = arith.constant 9.99999974E-6 : f32
    %48 = vector.broadcast %cst_20 : f32 to vector<1x128xf32>
    %49 = arith.addf %47, %48 : vector<1x128xf32>
    %50 = math.rsqrt %49 : vector<1x128xf32>
    %51 = arith.mulf %3, %50 : vector<1x128xf32>
    %52 = vector.broadcast %51 : vector<1x128xf32> to vector<8x128xf32>
    %53 = arith.mulf %42, %52 : vector<8x128xf32>
    %54 = vector.broadcast %4 : vector<1x128xf32> to vector<8x128xf32>
    %55 = arith.addf %53, %54 : vector<8x128xf32>
    %cst_21 = arith.constant 0.000000e+00 : f32
    %56 = vector.broadcast %cst_21 : f32 to vector<8x128xf32>
    %57 = arith.cmpf oge, %55, %56 : vector<8x128xf32>
    %cst_22 = arith.constant 0.00999999977 : f32
    %58 = vector.broadcast %cst_22 : f32 to vector<8x128xf32>
    %59 = arith.mulf %58, %55 : vector<8x128xf32>
    %60 = arith.select %57, %55, %59 : vector<8x128xi1>, vector<8x128xf32>
    %c2 = arith.constant 2 : index
    %c0_23 = arith.constant 0 : index
    %c0_24 = arith.constant 0 : index
    %61 = vector.load %arg1[%c2, %c0_23, %c0_24] : memref<3x128x128xf32, #tpu.memory_space<vmem>>, vector<1x128x128xf32>
    %62 = vector.shape_cast %61 : vector<1x128x128xf32> to vector<128x128xf32>
    %cst_25 = arith.constant dense<0.000000e+00> : vector<8x128xf32>
    %63 = tpu.matmul %60, %62, %cst_25 {dimension_numbers = #tpu.dot_dimension_numbers<[1], [0], [0], [1], [0, 0, 1, 1], [], []>} : vector<8x128xf32>, vector<128x128xf32>, vector<8x128xf32> -> vector<8x128xf32>
    %64 = vector.broadcast %5 : vector<1x128xf32> to vector<8x128xf32>
    %65 = arith.addf %63, %64 : vector<8x128xf32>
    %cst_26 = arith.constant 0.000000e+00 : f32
    %66 = vector.broadcast %cst_26 : f32 to vector<8x128xf32>
    %67 = arith.cmpf oge, %65, %66 : vector<8x128xf32>
    %cst_27 = arith.constant 0.00999999977 : f32
    %68 = vector.broadcast %cst_27 : f32 to vector<8x128xf32>
    %69 = arith.mulf %68, %65 : vector<8x128xf32>
    %70 = arith.select %67, %65, %69 : vector<8x128xi1>, vector<8x128xf32>
    %c0_28 = arith.constant 0 : index
    %c0_29 = arith.constant 0 : index
    %71 = vector.load %arg3[%c0_28, %c0_29] : memref<8x128xf32, #tpu.memory_space<vmem>>, vector<8x128xf32>
    tpu.vector_store %arg3[%c0_28, %c0_29], %70 {strides = array<i32>} : memref<8x128xf32, #tpu.memory_space<vmem>>, vector<8x128xf32>,
    return
  }
}

</mosaic_0001>

<bundles_post_ra>
// kernel: mlp_forward.1
= control target key start
LH: loop header
LB: loop body
LE: loop exit
PB: predicated region body
PF: predicated region fallthrough
CT: control target
= control target key end

     0   :  { %8 = vsyncpa [#allocation3], 0  ;;  %s764_s0 = inlined_call_operand.vmem [shape: f32[8,128], index: 0, kind: input, shape index: {}]   ;;  %s765_s1 = inlined_call_operand.hbm [shape: f32[3,128,128], index: 1, kind: input, shape index: {}]   ;;  %s766_s2 = inlined_call_operand.vmem [shape: f32[8,128], index: 2, kind: input, shape index: {}]   ;;  %s767_s3 = inlined_call_operand.hbm [shape: f32[8,128], index: 3, kind: output, shape index: {}]  }
   0x1   :  { %9 = vsyncpa [#allocation4], 0  ;;  %s666_s12 = smov [#allocation2]   ;;  %s618_s16 = scalar_lea.hbm %s765_s1, 6144 }
   0x2   :  { %s17_s13 = sshll.u32 %s666_s12, 4  ;;  %p619_p0 = scmp.ne.s32.totalorder %s765_s1, %s618_s16  ;;  %s18_s13 = int_to_ptr.vmem [resolvable:$true] %s17_s13 }
   0x3   :  { %p622_p1 = scmp.lt.u32.totalorder %s618_s16, %s765_s1 }
   0x5   :  { %p624_p2 = pnand %p622_p1, %p619_p0 }
   0x7   :  { %627 = shalt.err (!%p624_p2)
}
   0x8   :  { %s628_s21 = scalar_lea.vmem %s18_s13, 6144  ;;  %p633_p4 = scmp.lt.s32.totalorder %s18_s13, %s18_s13 }
   0x9   :  { %p629_p3 = scmp.ne.s32.totalorder %s18_s13, %s628_s21  ;;  %p634_p5 = scmp.lt.s32.totalorder %s628_s21, %s628_s21 }
   0xb   :  { %p635_p6 = por %p634_p5, %p633_p4 }
   0xd   :  { %p636_p7 = pnand %p635_p6, %p629_p3 }
   0xf   :  { %639 = shalt.err (!%p636_p7)
}
  0x10   :  { %s667_s22 = smov 128   ;;  %s668_s23 = smov 8  }
  0x11   :  { %23 = dma.hbm_to_vmem [thread:$0]  %s765_s1, 6144, %s18_s13, [#allocation3], %s667_s22, %s667_s22, %s668_s23  }
  0x12   :  { %662 = dma.done.wait [#allocation3], 6144  }
  0x13   :  { %663 = vsyncadd [#allocation3], 4294961152  ;;  %v669_v0 = vmov 0.0|0.0   ;;  %vm670_vm0 = vmmov 0   ;;  %v671_v1 = vmov 0.0   ;;  %v31_v2 = vld [vmem:[#allocation2] sm:$0xff] }
  0x14   :  { %535 = vmatprep.subr.bf16.mxu0 %v669_v0  ;;  %462 = vmatprep.mubr.msk.f32.mxu0 %vm670_vm0, %v671_v1  ;;  %v32_v3 = vld [vmem:[#allocation2 + $0x8] sm:$0xff]  ;;  %v33_v4 = vld [vmem:[#allocation2 + $0x10] sm:$0xff]  ;;  %v34_v6 = vld [vmem:[#allocation2 + $0x18] sm:$0xff] }
  0x15   :  { %559 = vmatprep.subr.bf16.mxu1 %v669_v0  ;;  %497 = vmatprep.mubr.msk.f32.mxu1 %vm670_vm0, %v671_v1  ;;  %v536_v5 = vpack.c.bf16 %v32_v3, %v31_v2  ;;  %v539_v7 = vpack.c.bf16 %v34_v6, %v33_v4  ;;  %v35_v8 = vld [vmem:[#allocation2 + $0x20] sm:$0xff]  ;;  %v36_v9 = vld [vmem:[#allocation2 + $0x28] sm:$0xff]  ;;  %v37_v11 = vld [vmem:[#allocation2 + $0x30] sm:$0xff] }
  0x16   :  { %v542_v10 = vpack.c.bf16 %v36_v9, %v35_v8  ;;  %v38_v12 = vld [vmem:[#allocation2 + $0x38] sm:$0xff]  ;;  %v39_v14 = vld [vmem:[#allocation2 + $0x40] sm:$0xff]  ;;  %v40_v15 = vld [vmem:[#allocation2 + $0x48] sm:$0xff] }
  0x17   :  { %537 = vmatpush3.bf16.msra.mxu0 %v536_v5  ;;  %v545_v13 = vpack.c.bf16 %v38_v12, %v37_v11  ;;  %v548_v16 = vpack.c.bf16 %v40_v15, %v39_v14  ;;  %v41_v17 = vld [vmem:[#allocation2 + $0x50] sm:$0xff]  ;;  %v42_v18 = vld [vmem:[#allocation2 + $0x58] sm:$0xff]  ;;  %v43_v20 = vld [vmem:[#allocation2 + $0x60] sm:$0xff] }
  0x18   :  { %538 = vmatprep.subr.bf16.mxu0 %v669_v0  ;;  %v551_v19 = vpack.c.bf16 %v42_v18, %v41_v17  ;;  %v44_v21 = vld [vmem:[#allocation2 + $0x68] sm:$0xff]  ;;  %v45_v23 = vld [vmem:[#allocation2 + $0x70] sm:$0xff]  ;;  %v46_v24 = vld [vmem:[#allocation2 + $0x78] sm:$0xff] }
  0x19   :  { %v554_v22 = vpack.c.bf16 %v44_v21, %v43_v20  ;;  %v557_v25 = vpack.c.bf16 %v46_v24, %v45_v23  ;;  %v30_v26 = vld [vmem:[%s764_s0] sm:$0xff]  ;;  %v151_v27 = vld [vmem:[#allocation2 + $0x80] sm:$0xff]  ;;  %v152_v28 = vld [vmem:[#allocation2 + $0x88] sm:$0xff] }
  0x1a   :  { %v560_v29 = vpack.c.bf16 %v152_v28, %v151_v27  ;;  %v153_v30 = vld [vmem:[#allocation2 + $0x90] sm:$0xff]  ;;  %v154_v31 = vld [vmem:[#allocation2 + $0x98] sm:$0xff]  ;;  %v155_v33 = vld [vmem:[#allocation2 + $0xa0] sm:$0xff] }
  0x1b   :  { %540 = vmatpush3.bf16.msra.mxu0 %v539_v7  ;;  %v563_v32 = vpack.c.bf16 %v154_v31, %v153_v30  ;;  %v156_v34 = vld [vmem:[#allocation2 + $0xa8] sm:$0xff]  ;;  %v157_v36 = vld [vmem:[#allocation2 + $0xb0] sm:$0xff]  ;;  %v158_v37 = vld [vmem:[#allocation2 + $0xb8] sm:$0xff]  ;;  %v137_v7 = vlaneseq }
  0x1c   :  { %541 = vmatprep.subr.bf16.mxu0 %v669_v0  ;;  %561 = vmatpush3.bf16.msra.mxu1 %v560_v29  ;;  %v566_v35 = vpack.c.bf16 %v156_v34, %v155_v33  ;;  %v569_v38 = vpack.c.bf16 %v158_v37, %v157_v36  ;;  %v159_v39 = vld [vmem:[#allocation2 + $0xc0] sm:$0xff]  ;;  %v160_v40 = vld [vmem:[#allocation2 + $0xc8] sm:$0xff]  ;;  %v161_v42 = vld [vmem:[#allocation2 + $0xd0] sm:$0xff] }
  0x1d   :  { %562 = vmatprep.subr.bf16.mxu1 %v669_v0  ;;  %v572_v41 = vpack.c.bf16 %v160_v40, %v159_v39  ;;  %v162_v43 = vld [vmem:[#allocation2 + $0xd8] sm:$0xff]  ;;  %v163_v45 = vld [vmem:[#allocation2 + $0xe0] sm:$0xff]  ;;  %v164_v46 = vld [vmem:[#allocation2 + $0xe8] sm:$0xff]  ;;  %v728_v8 = vshrl.u32 %v137_v7, 7 }
  0x1e   :  { %v575_v44 = vpack.c.bf16 %v162_v43, %v161_v42  ;;  %v578_v47 = vpack.c.bf16 %v164_v46, %v163_v45  ;;  %v165_v48 = vld [vmem:[#allocation2 + $0xf0] sm:$0xff]  ;;  %v166_v49 = vld [vmem:[#allocation2 + $0xf8] sm:$0xff]  ;;  %v270_v20 = vld [vmem:[#allocation2 + $0x100] sm:$0xff] }
  0x1f   :  { %543 = vmatpush3.bf16.msra.mxu0 %v542_v10  ;;  %v581_v50 = vpack.c.bf16 %v166_v49, %v165_v48  ;;  %v733_v9 = vld [vmem:[%s766_s2] sm:$0xff]  ;;  %v139_v10 = vsub.s32 0, %v728_v8  ;;  %v144_v11 = vsub.s32 1, %v728_v8  ;;  %v271_v21 = vld [vmem:[#allocation2 + $0x108] sm:$0xff]  ;;  %v273_v24 = vld [vmem:[#allocation2 + $0x118] sm:$0xff]  ;;  %s672_s2 = smov [#allocation5]  }
  0x20   :  { %544 = vmatprep.subr.bf16.mxu0 %v669_v0  ;;  %564 = vmatpush3.bf16.msra.mxu1 %v563_v32  ;;  %v272_v23 = vld [vmem:[#allocation2 + $0x110] sm:$0xff]  ;;  %v275_v27 = vld [vmem:[#allocation2 + $0x128] sm:$0xff]  ;;  %v277_v30 = vld [vmem:[#allocation2 + $0x138] sm:$0xff]  ;;  %s370_s28 = sshll.u32 %s672_s2, 4  ;;  %s371_s28 = int_to_ptr.vmem [resolvable:$true] %s370_s28 }
  0x21   :  { %565 = vmatprep.subr.bf16.mxu1 %v669_v0  ;;  %v145_v15 = vrot.slane %v733_v9, %v144_v11  ;;  %v276_v29 = vld [vmem:[#allocation2 + $0x130] sm:$0xff]  ;;  %v278_v32 = vld [vmem:[#allocation2 + $0x140] sm:$0xff]  ;;  %v279_v33 = vld [vmem:[#allocation2 + $0x148] sm:$0xff]  ;;  %v288_v11 = vsub.s32 4, %v728_v8  ;;  %s640_s29 = scalar_lea.vmem %s371_s28, 128  ;;  %p645_p9 = scmp.lt.s32.totalorder %s371_s28, %s371_s28 }
  0x22   :  { %v593_v31 = vpack.c.bf16 %v277_v30, %v276_v29  ;;  %v596_v34 = vpack.c.bf16 %v279_v33, %v278_v32  ;;  %v281_v36 = vld [vmem:[#allocation2 + $0x158] sm:$0xff]  ;;  %v283_v39 = vld [vmem:[#allocation2 + $0x168] sm:$0xff]  ;;  %p641_p8 = scmp.ne.s32.totalorder %s371_s28, %s640_s29  ;;  %p646_p10 = scmp.lt.s32.totalorder %s640_s29, %s640_s29 }
  0x23   :  { %546 = vmatpush3.bf16.msra.mxu0 %v545_v13  ;;  %v285_v42 = vld [vmem:[#allocation2 + $0x178] sm:$0xff] }
  0x24   :  { %547 = vmatprep.subr.bf16.mxu0 %v669_v0  ;;  %567 = vmatpush3.bf16.msra.mxu1 %v566_v35  ;;  %v280_v35 = vld [vmem:[#allocation2 + $0x150] sm:$0xff]  ;;  %p647_p11 = por %p646_p10, %p645_p9 }
  0x25   :  { %568 = vmatprep.subr.bf16.mxu1 %v669_v0  ;;  %v599_v37 = vpack.c.bf16 %v281_v36, %v280_v35 }
  0x26   :  { %p648_p12 = pnand %p647_p11, %p641_p8 }
  0x27   :  { %549 = vmatpush3.bf16.msra.mxu0 %v548_v16 }
  0x28   :  { %550 = vmatprep.subr.bf16.mxu0 %v669_v0  ;;  %570 = vmatpush3.bf16.msra.mxu1 %v569_v38  ;;  %v282_v38 = vld [vmem:[#allocation2 + $0x160] sm:$0xff] }
  0x29   :  { %571 = vmatprep.subr.bf16.mxu1 %v669_v0  ;;  %v602_v40 = vpack.c.bf16 %v283_v39, %v282_v38 }
  0x2b   :  { %552 = vmatpush3.bf16.msra.mxu0 %v551_v19 }
  0x2c   :  { %553 = vmatprep.subr.bf16.mxu0 %v669_v0  ;;  %573 = vmatpush3.bf16.msra.mxu1 %v572_v41  ;;  %v284_v41 = vld [vmem:[#allocation2 + $0x170] sm:$0xff] }
  0x2d   :  { %574 = vmatprep.subr.bf16.mxu1 %v669_v0  ;;  %v605_v43 = vpack.c.bf16 %v285_v42, %v284_v41 }
  0x2f   :  { %555 = vmatpush3.bf16.msra.mxu0 %v554_v22  ;;  %v584_v22 = vpack.c.bf16 %v271_v21, %v270_v20 }
  0x30   :  { %556 = vmatprep.subr.bf16.mxu0 %v669_v0  ;;  %576 = vmatpush3.bf16.msra.mxu1 %v575_v44 }
  0x31   :  { %577 = vmatprep.subr.bf16.mxu1 %v669_v0 }
  0x33   :  { %558 = vmatpush3.bf16.msra.mxu0 %v557_v25  ;;  %v587_v25 = vpack.c.bf16 %v273_v24, %v272_v23 }
  0x34   :  { %583 = vmatprep.subr.bf16.mxu0 %v669_v0  ;;  %579 = vmatpush3.bf16.msra.mxu1 %v578_v47 }
  0x35   :  { %580 = vmatprep.subr.bf16.mxu1 %v669_v0 }
  0x36   :  { %463 = vmatmul.mubr.f32.vlgmr.msra.gmra.mrb[0].mxu0 %v30_v26  ;;  %v274_v26 = vld [vmem:[#allocation2 + $0x120] sm:$0xff] }
  0x37   :  { %532 = vmatprep.mubr.msk.f32.mxu0 %vm670_vm0, %v671_v1  ;;  %585 = vmatpush3.bf16.msra.mxu0 %v584_v22  ;;  %v590_v28 = vpack.c.bf16 %v275_v27, %v274_v26 }
  0x38   :  { %582 = vmatpush3.bf16.msra.mxu1 %v581_v50  ;;  %586 = vmatprep.subr.bf16.mxu0 %v669_v0 }
  0x3b   :  { %588 = vmatpush3.bf16.msra.mxu0 %v587_v25 }
  0x3c   :  { %589 = vmatprep.subr.bf16.mxu0 %v669_v0 }
  0x3f   :  { %591 = vmatpush3.bf16.msra.mxu0 %v590_v28 }
  0x40   :  { %592 = vmatprep.subr.bf16.mxu0 %v669_v0 }
  0x43   :  { %594 = vmatpush3.bf16.msra.mxu0 %v593_v31 }
  0x44   :  { %595 = vmatprep.subr.bf16.mxu0 %v669_v0 }
  0x47   :  { %597 = vmatpush3.bf16.msra.mxu0 %v596_v34 }
  0x48   :  { %598 = vmatprep.subr.bf16.mxu0 %v669_v0 }
  0x4b   :  { %600 = vmatpush3.bf16.msra.mxu0 %v599_v37 }
  0x4c   :  { %601 = vmatprep.subr.bf16.mxu0 %v669_v0 }
  0x4f   :  { %603 = vmatpush3.bf16.msra.mxu0 %v602_v40 }
  0x50   :  { %604 = vmatprep.subr.bf16.mxu0 %v669_v0 }
  0x53   :  { %606 = vmatpush3.bf16.msra.mxu0 %v605_v43 }
 0x109   :  { %v113_v51 = vpop.f32.mrb[0].mxu0 }
 0x10a   :  { %v117_v52 = vrot.slane %v113_v51, 4  ;;  %v464_v53 = vpop.f32.mrb[1].mxu0 }
 0x10c   :  { %v118_v54 = vadd.f32 %v117_v52, %v113_v51 }
 0x10e   :  { %v119_v55 = vrot.slane %v118_v54, 2 }
 0x110   :  { %v120_v56 = vadd.f32 %v119_v55, %v118_v54 }
 0x112   :  { %v121_v57 = vrot.slane %v120_v56, 1 }
 0x114   :  { %v122_v58 = vadd.f32 %v121_v57, %v120_v56 }
 0x116   :  { %v124_v59 = vmul.f32 0.125, %v122_v58 }
 0x118   :  { %v125_v60 = vsub.f32 %v113_v51, %v124_v59 }
 0x11a   :  { %v126_v61 = vmul.f32 %v125_v60, %v125_v60 }
 0x11c   :  { %v127_v62 = vrot.slane %v126_v61, 4 }
 0x11e   :  { %v128_v63 = vadd.f32 %v127_v62, %v126_v61  ;;  %v258_v62 = vsub.s32 2, %v728_v8 }
 0x120   :  { %v129_v1 = vrot.slane %v128_v63, 2 }
 0x122   :  { %v130_v2 = vadd.f32 %v129_v1, %v128_v63  ;;  %v263_v63 = vsub.s32 3, %v728_v8 }
 0x124   :  { %v131_v3 = vrot.slane %v130_v2, 1 }
 0x126   :  { %v132_v4 = vadd.f32 %v131_v3, %v130_v2 }
 0x128   :  { %v133_v5 = vmul.f32 0.125, %v132_v4  ;;  %v264_v4 = vrot.slane %v733_v9, %v263_v63 }
 0x12a   :  { %v134_v6 = vadd.f32 1e-05, %v133_v5 }
 0x12c   :  { %614 = vrsqrt.f32 %v134_v6 }
 0x136   :  { %v615_v12 = vpop.eup %614 }
 0x137   :  { %v136_v13 = vmul.f32 %v615_v12, %v733_v9  ;;  %v289_v12 = vrot.slane %v733_v9, %v288_v11 }
 0x139   :  { %v140_v14 = vrot.slane %v136_v13, %v139_v10 }
 0x13b   :  { %v141_v16 = vmul.f32 %v140_v14, %v125_v60 }
 0x13d   :  { %v146_v17 = vadd.f32 %v145_v15, %v141_v16 }
 0x13f   :  { %vm147_vm1 = vcmp.ge.f32.partialorder %v146_v17, 0.0  ;;  %v148_v18 = vmul.f32 0.01, %v146_v17 }
 0x141   :  { %v149_v19 = vsel %vm147_vm1, %v146_v17, %v148_v18 }
 0x142   :  { %498 = vmatmul.mubr.f32.vlgmr.msra.gmra.mrb[0].mxu1 %v149_v19 }
 0x215   :  { %v233_v44 = vpop.f32.mrb[0].mxu1 }
 0x216   :  { %v237_v45 = vrot.slane %v233_v44, 4  ;;  %v499_v46 = vpop.f32.mrb[1].mxu1 }
 0x218   :  { %v238_v47 = vadd.f32 %v237_v45, %v233_v44 }
 0x21a   :  { %v239_v48 = vrot.slane %v238_v47, 2 }
 0x21c   :  { %v240_v49 = vadd.f32 %v239_v48, %v238_v47 }
 0x21e   :  { %v241_v50 = vrot.slane %v240_v49, 1 }
 0x220   :  { %v242_v51 = vadd.f32 %v241_v50, %v240_v49 }
 0x222   :  { %v243_v52 = vmul.f32 0.125, %v242_v51 }
 0x224   :  { %v244_v53 = vsub.f32 %v233_v44, %v243_v52 }
 0x226   :  { %v245_v54 = vmul.f32 %v244_v53, %v244_v53 }
 0x228   :  { %v246_v55 = vrot.slane %v245_v54, 4 }
 0x22a   :  { %v247_v56 = vadd.f32 %v246_v55, %v245_v54 }
 0x22c   :  { %v248_v57 = vrot.slane %v247_v56, 2 }
 0x22e   :  { %v249_v58 = vadd.f32 %v248_v57, %v247_v56 }
 0x230   :  { %v250_v0 = vrot.slane %v249_v58, 1 }
 0x232   :  { %v251_v59 = vadd.f32 %v250_v0, %v249_v58 }
 0x234   :  { %v252_v60 = vmul.f32 0.125, %v251_v59 }
 0x236   :  { %v253_v61 = vadd.f32 1e-05, %v252_v60 }
 0x238   :  { %616 = vrsqrt.f32 %v253_v61 }
 0x242   :  { %v617_v1 = vpop.eup %616 }
 0x243   :  { %v255_v2 = vmul.f32 %v617_v1, %v733_v9 }
 0x245   :  { %v259_v3 = vrot.slane %v255_v2, %v258_v62 }
 0x247   :  { %v260_v5 = vmul.f32 %v259_v3, %v244_v53 }
 0x249   :  { %v265_v6 = vadd.f32 %v264_v4, %v260_v5 }
 0x24b   :  { %vm266_vm2 = vcmp.ge.f32.partialorder %v265_v6, 0.0  ;;  %v267_v7 = vmul.f32 0.01, %v265_v6 }
 0x24d   :  { %v268_v10 = vsel %vm266_vm2, %v265_v6, %v267_v7 }
 0x24e   :  { %533 = vmatmul.mubr.f32.vlgmr.msra.gmra.mrb[2].mxu0 %v268_v10 }
 0x321   :  { %v356_v13 = vpop.f32.mrb[2].mxu0 }
 0x322   :  { %v357_v14 = vadd.f32 %v356_v13, %v289_v12  ;;  %v534_v15 = vpop.f32.mrb[3].mxu0 }
 0x324   :  { %v361_v16 = vmul.f32 0.01, %v357_v14  ;;  %vm360_vm3 = vcmp.ge.f32.partialorder %v357_v14, 0.0 }
 0x326   :  { %v362_v17 = vsel %vm360_vm3, %v357_v14, %v361_v16 }
 0x327   :  { %363 = vst [vmem:[#allocation5] sm:$0xff] %v362_v17 }
 0x328   :  { %651 = shalt.err (!%p648_p12)
}
 0x329   :  { %s652_s5 = scalar_lea.hbm %s767_s3, 128 }
 0x32a   :  { %p653_p13 = scmp.ne.s32.totalorder %s767_s3, %s652_s5  ;;  %p656_p0 = scmp.lt.u32.totalorder %s652_s5, %s767_s3 }
 0x32c   :  { %p658_p1 = pnand %p656_p0, %p653_p13 }
 0x32e   :  { %661 = shalt.err (!%p658_p1)
}
 0x32f   :  { %373 = dma.vmem_to_hbm [thread:$0]  %s371_s28, 128, %s767_s3, [#allocation4]  }
 0x330   :  { %664 = dma.done.wait [#allocation4], 128  }
 0x331   :  { %665 = vsyncadd [#allocation4], 4294967168 }
 0x332   :  { %377 = vsyncpa [#allocation3], 1 }
 0x333   :  { %378 = vsyncpa [#allocation4], 1 }

</bundles_post_ra>
